<compile_context>
chip_gen: v7x
topology: tpu7x:2x2x1
jax: 0.10.0
libtpu: 0.0.40
codegen_flags: <defaults>
</compile_context>

<pallas_src>
import functools

import jax
import jax.numpy as jnp
from jax.experimental import pallas as pl
from jax.experimental.pallas import tpu as pltpu


# --------------------------- single-pass (fused) path -----------------------

def _se_fused_kernel(x_ref, w1t_ref, b1_ref, w2t_ref, b2_ref, o_ref):
    # x_ref block: (bb, C, HW), any float dtype.  Weights are f32, VMEM-resident.
    # --- squeeze: global average pool over the spatial (lane) axis, f32 acc ---
    pooled = jnp.mean(x_ref[...].astype(jnp.float32), axis=-1)          # (bb, C)

    # --- excitation: two tiny FCs batched across the bb images of the block ---
    z = jnp.dot(pooled, w1t_ref[...],
                preferred_element_type=jnp.float32) + b1_ref[...]       # (bb, C_r)
    z = jnp.maximum(z, 0.0)                                             # ReLU
    s = jnp.dot(z, w2t_ref[...],
                preferred_element_type=jnp.float32) + b2_ref[...]       # (bb, C)
    s = jax.nn.sigmoid(s)

    # --- scale: re-index x_ref here (keeps the big block's live range short) ---
    o_ref[...] = (x_ref[...] * s[:, :, None].astype(o_ref.dtype)).astype(o_ref.dtype)


# --------------------------- two-pass (HW-tiled) path ------------------------

def _se_pool_kernel(hw_total, x_ref, sum_ref, acc_ref):
    # Grid: (batch, hw_tile).  Accumulate per-channel sums over HW tiles.
    t = pl.program_id(1)
    thw = x_ref.shape[-1]

    @pl.when(t == 0)
    def _():
        acc_ref[...] = jnp.zeros_like(acc_ref)

    # Mask the ragged tail tile (and any Pallas boundary padding) to zero.
    col = jax.lax.broadcasted_iota(jnp.int32, x_ref.shape, dimension=2) + t * thw
    xv = jnp.where(col < hw_total, x_ref[...].astype(jnp.float32), 0.0)
    acc_ref[...] += jnp.sum(xv, axis=-1, keepdims=True)                 # (1, C, 1)

    @pl.when(t == pl.num_programs(1) - 1)
    def _():
        sum_ref[...] = acc_ref[...]


def _se_scale_kernel(x_ref, s_ref, o_ref):
    # x_ref: (1, C, thw); s_ref: (1, C, 1) broadcast over the spatial axis.
    s = s_ref[...].astype(o_ref.dtype)
    o_ref[...] = (x_ref[...] * s).astype(o_ref.dtype)


# --------------------------- configuration helpers ---------------------------

def _tpu_generation_config():
    """Generation-aware block budget / scoped-VMEM limit / minimum grid steps."""
    vmem_cap = None
    kind = ""
    try:
        vmem_cap = getattr(pltpu.get_tpu_info(), "vmem_capacity_bytes", None)
    except Exception:
        pass
    try:
        kind = jax.devices()[0].device_kind.lower()
    except Exception:
        pass

    is_v7 = ("v7" in kind) or ("tpu7" in kind) or (
        vmem_cap is not None and vmem_cap <= (80 << 20))
    if is_v7:
        # 64 MiB VMEM per TensorCore, two TCs/chip: tighter block cap and keep
        # >= 4 grid steps so both cores get balanced, pipelined work.
        return dict(block_budget_bytes=7 << 20, vmem_limit_bytes=44 << 20,
                    min_grid_steps=4)
    if "v6" in kind:
        # 128 MiB VMEM, single TC, ~1.4 TB/s HBM: go big on blocks.
        return dict(block_budget_bytes=12 << 20, vmem_limit_bytes=64 << 20,
                    min_grid_steps=1)
    # v5e or unknown 128 MiB-class part: 8 MiB blocks already amortize the
    # ~0.35 us/step overhead at ~0.82 TB/s HBM.
    return dict(block_budget_bytes=8 << 20, vmem_limit_bytes=40 << 20,
                min_grid_steps=1)


# --------------------------------- wrapper -----------------------------------

def _se_fused(x, w1t, b1r, w2t, b2r, block_budget, vmem_limit, min_grid_steps):
    B, C, HW = x.shape
    C_r = w1t.shape[1]
    itemsize = jnp.dtype(x.dtype).itemsize
    per_image = C * HW * itemsize

    bb = max(1, min(B, block_budget // per_image))
    if min_grid_steps > 1 and B >= min_grid_steps:
        # Megacore (v7x): keep at least `min_grid_steps` grid steps.
        bb = max(1, min(bb, B // min_grid_steps))

    grid = (pl.cdiv(B, bb),)   # boundary block is masked by Pallas; no bb|B needed

    return pl.pallas_call(
        _se_fused_kernel,
        out_shape=jax.ShapeDtypeStruct((B, C, HW), x.dtype),
        grid_spec=pltpu.PrefetchScalarGridSpec(
            num_scalar_prefetch=0,
            grid=grid,
            in_specs=[
                pl.BlockSpec((bb, C, HW), lambda b: (b, 0, 0)),   # activation chunk
                pl.BlockSpec((C, C_r), lambda b: (0, 0)),         # fc1 weight (T)
                pl.BlockSpec((1, C_r), lambda b: (0, 0)),         # fc1 bias
                pl.BlockSpec((C_r, C), lambda b: (0, 0)),         # fc2 weight (T)
                pl.BlockSpec((1, C), lambda b: (0, 0)),           # fc2 bias
            ],
            out_specs=pl.BlockSpec((bb, C, HW), lambda b: (b, 0, 0)),
        ),
        compiler_params=pltpu.CompilerParams(
            dimension_semantics=("parallel",),
            vmem_limit_bytes=vmem_limit),
    )(x, w1t, b1r, w2t, b2r)


def _se_tiled(x, w1t, b1r, w2t, b2r, block_budget, vmem_limit):
    """Two-pass path for images too large to hold a full (1, C, HW) slab."""
    B, C, HW = x.shape
    itemsize = jnp.dtype(x.dtype).itemsize
    bb = 1
    thw = max(128, (block_budget // (C * itemsize)) // 128 * 128)   # lane-aligned
    thw = min(thw, HW)
    n_hw = pl.cdiv(HW, thw)
    n_b = pl.cdiv(B, bb)

    # Pass 1: per-channel sums over lane-aligned HW tiles (f32 accumulation).
    sums = pl.pallas_call(
        functools.partial(_se_pool_kernel, HW),
        out_shape=jax.ShapeDtypeStruct((B, C, 1), jnp.float32),
        grid_spec=pltpu.PrefetchScalarGridSpec(
            num_scalar_prefetch=0,
            grid=(n_b, n_hw),
            in_specs=[pl.BlockSpec((bb, C, thw), lambda b, t: (b, 0, t))],
            out_specs=pl.BlockSpec((bb, C, 1), lambda b, t: (b, 0, 0)),
            scratch_shapes=[pltpu.VMEM((bb, C, 1), jnp.float32)],
        ),
        compiler_params=pltpu.CompilerParams(
            dimension_semantics=("parallel", "arbitrary"),
            vmem_limit_bytes=vmem_limit),
    )(x)

    # Tiny excitation MLP on the (B, C) pooled means -- plain JAX (negligible).
    pooled = sums[:, :, 0] / jnp.float32(HW)                        # (B, C)
    z = jnp.maximum(pooled @ w1t + b1r, 0.0)                        # (B, C_r)
    s = jax.nn.sigmoid(z @ w2t + b2r)                               # (B, C)
    s3 = s[:, :, None]                                              # (B, C, 1)

    # Pass 2: re-stream x tiles and scale.
    return pl.pallas_call(
        _se_scale_kernel,
        out_shape=jax.ShapeDtypeStruct((B, C, HW), x.dtype),
        grid_spec=pltpu.PrefetchScalarGridSpec(
            num_scalar_prefetch=0,
            grid=(n_b, n_hw),
            in_specs=[pl.BlockSpec((bb, C, thw), lambda b, t: (b, 0, t)),
                      pl.BlockSpec((bb, C, 1), lambda b, t: (b, 0, 0))],
            out_specs=pl.BlockSpec((bb, C, thw), lambda b, t: (b, 0, t)),
        ),
        compiler_params=pltpu.CompilerParams(
            dimension_semantics=("parallel", "parallel"),
            vmem_limit_bytes=vmem_limit),
    )(x, s3)


def se_module(x_nchw, w1, b1, w2, b2, *,
              block_budget_bytes=None, vmem_limit_bytes=None, min_grid_steps=None):
    """SEModule forward.  x_nchw: (B, C, H, W), any float dtype (f32/bf16).
    PyTorch-shaped params: w1 (C_r, C), b1 (C_r,), w2 (C, C_r), b2 (C,)."""
    B, C, H, W = x_nchw.shape
    HW = H * W
    C_r = w1.shape[0]

    cfg = _tpu_generation_config()
    if block_budget_bytes is None:
        block_budget_bytes = cfg["block_budget_bytes"]
    if vmem_limit_bytes is None:
        vmem_limit_bytes = cfg["vmem_limit_bytes"]
    if min_grid_steps is None:
        min_grid_steps = cfg["min_grid_steps"]

    x = x_nchw.reshape(B, C, HW)
    itemsize = jnp.dtype(x.dtype).itemsize
    per_image = C * HW * itemsize

    # Pre-transpose weights once (host side) so the kernel runs row-major
    # (bb, C) @ (C, C_r) / (bb, C_r) @ (C_r, C) matmuls; keep params in f32.
    w1t = w1.T.astype(jnp.float32)          # (C, C_r)
    w2t = w2.T.astype(jnp.float32)          # (C_r, C)
    b1r = b1.reshape(1, C_r).astype(jnp.float32)
    b2r = b2.reshape(1, C).astype(jnp.float32)

    if per_image <= block_budget_bytes:
        out = _se_fused(x, w1t, b1r, w2t, b2r,
                        block_budget_bytes, vmem_limit_bytes, min_grid_steps)
    else:
        out = _se_tiled(x, w1t, b1r, w2t, b2r,
                        block_budget_bytes, vmem_limit_bytes)
    return out.reshape(B, C, H, W)


def se_module_ref(x, w1, b1, w2, b2):
    """Pure-JAX reference matching the PyTorch forward."""
    pooled = jnp.mean(x, axis=(2, 3), keepdims=True)                       # (B,C,1,1)
    z = jnp.einsum('oc,bcij->boij', w1, pooled) + b1[None, :, None, None]  # (B,C_r,1,1)
    z = jnp.maximum(z, 0.0)
    s = jnp.einsum('oc,bcij->boij', w2, z) + b2[None, :, None, None]       # (B,C,1,1)
    s = jax.nn.sigmoid(s)
    return x * s


if __name__ == "__main__":
    key = jax.random.PRNGKey(0)
    k_x, k_w1, k_b1, k_w2, k_b2, k_x2 = jax.random.split(key, 6)

    # Shapes consistent with the module: channels=32, reduction=16 (C_r=2).
    B, C, H, W = 4, 32, 16, 16
    reduction = 16
    C_r = C // reduction

    x = jax.random.normal(k_x, (B, C, H, W), dtype=jnp.float32)
    # Conv2d(C, C//r, 1) / Conv2d(C//r, C, 1) parameters (squeezed 1x1 kernels).
    w1 = jax.random.normal(k_w1, (C_r, C), dtype=jnp.float32) * 0.1
    b1 = jax.random.normal(k_b1, (C_r,), dtype=jnp.float32) * 0.1
    w2 = jax.random.normal(k_w2, (C, C_r), dtype=jnp.float32) * 0.1
    b2 = jax.random.normal(k_b2, (C,), dtype=jnp.float32) * 0.1

    ref = se_module_ref(x, w1, b1, w2, b2)

    # 1) fp32, fused single-pass path (generation-aware block sizing).
    out = jax.block_until_ready(se_module(x, w1, b1, w2, b2))
    assert out.shape == (B, C, H, W)
    assert jnp.allclose(out, ref, atol=1e-5, rtol=1e-5), "fp32 fused mismatch"

    # 2) bf16 streaming (halved HBM traffic); mean / FCs still accumulate in f32.
    x_bf16 = x.astype(jnp.bfloat16)
    ref_bf16 = se_module_ref(x_bf16.astype(jnp.float32), w1, b1, w2, b2)
    out_bf16 = jax.block_until_ready(se_module(x_bf16, w1, b1, w2, b2))
    assert out_bf16.dtype == jnp.bfloat16
    assert jnp.allclose(out_bf16.astype(jnp.float32), ref_bf16,
                        atol=5e-2, rtol=5e-2), "bf16 fused mismatch"

    # 3) Two-pass HW-tiled path (forced via a tiny block budget) with a ragged
    #    spatial size (18*18 = 324) to exercise tail-tile masking.
    B2, H2, W2 = 2, 18, 18
    x2 = jax.random.normal(k_x2, (B2, C, H2, W2), dtype=jnp.float32)
    ref2 = se_module_ref(x2, w1, b1, w2, b2)
    out2 = jax.block_until_ready(
        se_module(x2, w1, b1, w2, b2, block_budget_bytes=16 << 10))
    assert jnp.allclose(out2, ref2, atol=1e-5, rtol=1e-5), "tiled-path mismatch"

    print("KERNEL_OK")
</pallas_src>

<mosaic_0001>
module attributes {stable_mosaic.version = 11 : i64} {
  func.func @_se_fused_kernel(%arg0: i32, %arg1: memref<4x32x256xf32, #tpu.memory_space<vmem>>, %arg2: memref<32x2xf32, #tpu.memory_space<vmem>>, %arg3: memref<1x2xf32, #tpu.memory_space<vmem>>, %arg4: memref<2x32xf32, #tpu.memory_space<vmem>>, %arg5: memref<1x32xf32, #tpu.memory_space<vmem>>, %arg6: memref<4x32x256xf32, #tpu.memory_space<vmem>>) attributes {dimension_semantics = [#tpu.dimension_semantics<parallel>], iteration_bounds = array<i64: 1>, scalar_prefetch = 0 : i64, scratch_operands = 0 : i64, tpu.core_type = #tpu.core_type<tc>, window_params = [{transform_indices = @transform_0, window_bounds = array<i64: 4, 32, 256>}, {pipeline_mode = #tpu.pipeline_mode<synchronous>, transform_indices = @transform_1, window_bounds = array<i64: 32, 2>}, {pipeline_mode = #tpu.pipeline_mode<synchronous>, transform_indices = @transform_2, window_bounds = array<i64: 1, 2>}, {pipeline_mode = #tpu.pipeline_mode<synchronous>, transform_indices = @transform_3, window_bounds = array<i64: 2, 32>}, {pipeline_mode = #tpu.pipeline_mode<synchronous>, transform_indices = @transform_4, window_bounds = array<i64: 1, 32>}, {transform_indices = @transform_5, window_bounds = array<i64: 4, 32, 256>}]} {
    %c0 = arith.constant 0 : index
    %c0_0 = arith.constant 0 : index
    %c0_1 = arith.constant 0 : index
    %0 = vector.load %arg1[%c0, %c0_0, %c0_1] : memref<4x32x256xf32, #tpu.memory_space<vmem>>, vector<4x32x256xf32>
    %cst = arith.constant dense<0.000000e+00> : vector<4x32xf32>
    %1 = vector.multi_reduction <add>, %0, %cst [2] : vector<4x32x256xf32> to vector<4x32xf32>
    %cst_2 = arith.constant 2.560000e+02 : f32
    %2 = vector.broadcast %cst_2 : f32 to vector<4x32xf32>
    %3 = arith.divf %1, %2 : vector<4x32xf32>
    %c0_3 = arith.constant 0 : index
    %c0_4 = arith.constant 0 : index
    %4 = vector.load %arg2[%c0_3, %c0_4] : memref<32x2xf32, #tpu.memory_space<vmem>>, vector<32x2xf32>
    %cst_5 = arith.constant dense<0.000000e+00> : vector<4x2xf32>
    %5 = tpu.matmul %3, %4, %cst_5 {dimension_numbers = #tpu.dot_dimension_numbers<[1], [0], [0], [1], [0, 0, 1, 1], [], []>} : vector<4x32xf32>, vector<32x2xf32>, vector<4x2xf32> -> vector<4x2xf32>
    %c0_6 = arith.constant 0 : index
    %c0_7 = arith.constant 0 : index
    %6 = vector.load %arg3[%c0_6, %c0_7] : memref<1x2xf32, #tpu.memory_space<vmem>>, vector<1x2xf32>
    %7 = vector.broadcast %6 : vector<1x2xf32> to vector<4x2xf32>
    %8 = arith.addf %5, %7 : vector<4x2xf32>
    %cst_8 = arith.constant 0.000000e+00 : f32
    %9 = vector.broadcast %cst_8 : f32 to vector<4x2xf32>
    %10 = arith.maximumf %8, %9 : vector<4x2xf32>
    %c0_9 = arith.constant 0 : index
    %c0_10 = arith.constant 0 : index
    %11 = vector.load %arg4[%c0_9, %c0_10] : memref<2x32xf32, #tpu.memory_space<vmem>>, vector<2x32xf32>
    %cst_11 = arith.constant dense<0.000000e+00> : vector<4x32xf32>
    %12 = tpu.matmul %10, %11, %cst_11 {dimension_numbers = #tpu.dot_dimension_numbers<[1], [0], [0], [1], [0, 0, 1, 1], [], []>} : vector<4x2xf32>, vector<2x32xf32>, vector<4x32xf32> -> vector<4x32xf32>
    %c0_12 = arith.constant 0 : index
    %c0_13 = arith.constant 0 : index
    %13 = vector.load %arg5[%c0_12, %c0_13] : memref<1x32xf32, #tpu.memory_space<vmem>>, vector<1x32xf32>
    %14 = vector.broadcast %13 : vector<1x32xf32> to vector<4x32xf32>
    %15 = arith.addf %12, %14 : vector<4x32xf32>
    %16 = arith.negf %15 : vector<4x32xf32>
    %17 = math.exp %16 : vector<4x32xf32>
    %cst_14 = arith.constant 1.000000e+00 : f32
    %18 = vector.broadcast %cst_14 : f32 to vector<4x32xf32>
    %19 = arith.addf %18, %17 : vector<4x32xf32>
    %20 = arith.divf %18, %19 : vector<4x32xf32>
    %c0_15 = arith.constant 0 : index
    %c0_16 = arith.constant 0 : index
    %c0_17 = arith.constant 0 : index
    %21 = vector.load %arg1[%c0_15, %c0_16, %c0_17] : memref<4x32x256xf32, #tpu.memory_space<vmem>>, vector<4x32x256xf32>
    %22 = vector.shape_cast %20 : vector<4x32xf32> to vector<4x32x1xf32>
    %23 = vector.broadcast %22 : vector<4x32x1xf32> to vector<4x32x256xf32>
    %24 = arith.mulf %21, %23 : vector<4x32x256xf32>
    %c0_18 = arith.constant 0 : index
    %c0_19 = arith.constant 0 : index
    %c0_20 = arith.constant 0 : index
    %25 = vector.load %arg6[%c0_18, %c0_19, %c0_20] : memref<4x32x256xf32, #tpu.memory_space<vmem>>, vector<4x32x256xf32>
    tpu.vector_store %arg6[%c0_18, %c0_19, %c0_20], %24 {strides = array<i32>} : memref<4x32x256xf32, #tpu.memory_space<vmem>>, vector<4x32x256xf32>,
    return
  }
  func.func @transform_0(%arg0: i32) -> (i32, i32, i32) {
    %c0_i32 = arith.constant 0 : i32
    %c0_i32_0 = arith.constant 0 : i32
    %c0_i32_1 = arith.constant 0 : i32
    return %arg0, %c0_i32, %c0_i32_0 : i32, i32, i32
  }
  func.func @transform_1(%arg0: i32) -> (i32, i32) {
    %c0_i32 = arith.constant 0 : i32
    %c0_i32_0 = arith.constant 0 : i32
    %c0_i32_1 = arith.constant 0 : i32
    return %c0_i32, %c0_i32_0 : i32, i32
  }
  func.func @transform_2(%arg0: i32) -> (i32, i32) {
    %c0_i32 = arith.constant 0 : i32
    %c0_i32_0 = arith.constant 0 : i32
    %c0_i32_1 = arith.constant 0 : i32
    return %c0_i32, %c0_i32_0 : i32, i32
  }
  func.func @transform_3(%arg0: i32) -> (i32, i32) {
    %c0_i32 = arith.constant 0 : i32
    %c0_i32_0 = arith.constant 0 : i32
    %c0_i32_1 = arith.constant 0 : i32
    return %c0_i32, %c0_i32_0 : i32, i32
  }
  func.func @transform_4(%arg0: i32) -> (i32, i32) {
    %c0_i32 = arith.constant 0 : i32
    %c0_i32_0 = arith.constant 0 : i32
    %c0_i32_1 = arith.constant 0 : i32
    return %c0_i32, %c0_i32_0 : i32, i32
  }
  func.func @transform_5(%arg0: i32) -> (i32, i32, i32) {
    %c0_i32 = arith.constant 0 : i32
    %c0_i32_0 = arith.constant 0 : i32
    %c0_i32_1 = arith.constant 0 : i32
    return %arg0, %c0_i32, %c0_i32_0 : i32, i32, i32
  }
}

</mosaic_0001>

<bundles_post_ra>
// kernel: tpu_custom_call.1
= control target key start
LH: loop header
LB: loop body
LE: loop exit
PB: predicated region body
PF: predicated region fallthrough
CT: control target
= control target key end

     0   :  { %10 = vsyncpa [#allocation3], 0  ;;  %s905_s0 = inlined_call_operand.hbm [shape: f32[4,32,256], index: 0, kind: input, shape index: {}]   ;;  %s906_s1 = inlined_call_operand.vmem [shape: f32[32,2], index: 1, kind: input, shape index: {}]   ;;  %s907_s2 = inlined_call_operand.vmem [shape: f32[1,2], index: 2, kind: input, shape index: {}]   ;;  %s908_s3 = inlined_call_operand.vmem [shape: f32[2,32], index: 3, kind: input, shape index: {}]   ;;  %s909_s4 = inlined_call_operand.vmem [shape: f32[1,32], index: 4, kind: input, shape index: {}]   ;;  %s910_s5 = inlined_call_operand.hbm [shape: f32[4,32,256], index: 5, kind: output, shape index: {}]  }
   0x1   :  { %11 = vsyncpa [#allocation4], 0  ;;  %s666_s18 = smov [#allocation2]   ;;  %s618_s22 = scalar_lea.hbm %s905_s0, 4096 }
   0x2   :  { %s17_s19 = sshll.u32 %s666_s18, 4  ;;  %p619_p0 = scmp.ne.s32.totalorder %s905_s0, %s618_s22  ;;  %s18_s19 = int_to_ptr.vmem [resolvable:$true] %s17_s19 }
   0x3   :  { %p622_p1 = scmp.lt.u32.totalorder %s618_s22, %s905_s0 }
   0x5   :  { %p624_p2 = pnand %p622_p1, %p619_p0 }
   0x7   :  { %627 = shalt.err (!%p624_p2)
}
   0x8   :  { %s628_s27 = scalar_lea.vmem %s18_s19, 4096  ;;  %p633_p4 = scmp.lt.s32.totalorder %s18_s19, %s18_s19 }
   0x9   :  { %p629_p3 = scmp.ne.s32.totalorder %s18_s19, %s628_s27  ;;  %p634_p5 = scmp.lt.s32.totalorder %s628_s27, %s628_s27 }
   0xb   :  { %p635_p6 = por %p634_p5, %p633_p4 }
   0xd   :  { %p636_p7 = pnand %p635_p6, %p629_p3 }
   0xf   :  { %639 = shalt.err (!%p636_p7)
}
  0x10   :  { %s667_s28 = smov 256   ;;  %s668_s29 = smov 16  }
  0x11   :  { %23 = dma.hbm_to_vmem [thread:$0]  %s905_s0, 4096, %s18_s19, [#allocation3], %s667_s28, %s667_s28, %s668_s29  }
  0x12   :  { %662 = dma.done.wait [#allocation3], 4096  }
  0x13   :  { %663 = vsyncadd [#allocation3], 4294963200  ;;  %v718_v0 = vld [vmem:[#allocation2 + $0x40] sm:$0xff]  ;;  %v720_v1 = vld [vmem:[#allocation2 + $0x48] sm:$0xff]  ;;  %v669_v51 = vmov 0.0|0.0   ;;  %vm670_vm0 = vmmov 0   ;;  %v159_v62 = vlaneseq }
  0x14   :  { %v722_v2 = vld [vmem:[#allocation2] sm:$0xff]  ;;  %v79_v3 = vadd.f32 %v720_v1, %v718_v0  ;;  %v726_v4 = vld [vmem:[#allocation2 + $0x8] sm:$0xff]  ;;  %v728_v5 = vld [vmem:[#allocation2 + $0x50] sm:$0xff]  ;;  %601 = vmatprep.subr.bf16.mxu0 %v669_v51  ;;  %v671_v55 = vmov 0.0   ;;  %vm170_vm1 = vcmask 130112   ;;  %vm177_vm2 = vcmask 195712  }
  0x15   :  { %v730_v6 = vld [vmem:[#allocation2 + $0x58] sm:$0xff]  ;;  %v67_v7 = vadd.f32 %v726_v4, %v722_v2  ;;  %v734_v8 = vld [vmem:[#allocation2 + $0x10] sm:$0xff]  ;;  %v742_v12 = vld [vmem:[#allocation2 + $0x60] sm:$0xff]  ;;  %593 = vmatprep.mubr.msk.f32.mxu0 %vm670_vm0, %v671_v55  ;;  %596 = vmatprep.subr.mxu1 %v671_v55  ;;  %vm184_vm3 = vcmask 261312   ;;  %vm243_vm4 = vcmask 1041409   ;;  %vm245_vm5 = vcmask 1042434  }
  0x16   :  { %v736_v9 = vld [vmem:[#allocation2 + $0x18] sm:$0xff]  ;;  %80 = vadd.xlane.f32.xlu1 %v79_v3  ;;  %v82_v10 = vadd.f32 %v730_v6, %v728_v5  ;;  %v744_v13 = vld [vmem:[#allocation2 + $0x68] sm:$0xff]  ;;  %v746_v14 = vld [vmem:[#allocation2 + $0x20] sm:$0xff]  ;;  %598 = vmatprep.mubr.msk.f32.mxu1 %vm670_vm0, %v671_v55  ;;  %vm247_vm6 = vcmask 1043459   ;;  %vm249_vm7 = vcmask 261120   ;;  %vm335_vm8 = vcmask 1041408  }
  0x17   :  { %68 = vadd.xlane.f32.xlu0 %v67_v7  ;;  %v70_v11 = vadd.f32 %v736_v9, %v734_v8  ;;  %v748_v15 = vld [vmem:[#allocation2 + $0x28] sm:$0xff]  ;;  %v85_v16 = vadd.f32 %v744_v13, %v742_v12  ;;  %v754_v18 = vld [vmem:[#allocation2 + $0x90] sm:$0xff]  ;;  %v756_v19 = vld [vmem:[#allocation2 + $0x98] sm:$0xff]  ;;  %v160_v7 = vand.u32 127, %v159_v62  ;;  %vm331_vm9 = vcmask 15360  }
  0x18   :  { %v73_v17 = vadd.f32 %v748_v15, %v746_v14  ;;  %v758_v20 = vld [vmem:[#allocation2 + $0x80] sm:$0xff]  ;;  %v760_v21 = vld [vmem:[#allocation2 + $0x88] sm:$0xff]  ;;  %v94_v22 = vadd.f32 %v756_v19, %v754_v18  ;;  %v766_v24 = vld [vmem:[#allocation2 + $0x70] sm:$0xff] }
  0x19   :  { %v91_v23 = vadd.f32 %v760_v21, %v758_v20  ;;  %v768_v25 = vld [vmem:[#allocation2 + $0x78] sm:$0xff]  ;;  %v770_v26 = vld [vmem:[#allocation2 + $0x30] sm:$0xff]  ;;  %v778_v30 = vld [vmem:[#allocation2 + $0xc0] sm:$0xff] }
  0x1a   :  { %83 = vadd.xlane.f32.xlu1 %v82_v10  ;;  %v772_v27 = vld [vmem:[#allocation2 + $0x38] sm:$0xff]  ;;  %v88_v28 = vadd.f32 %v768_v25, %v766_v24  ;;  %v780_v31 = vld [vmem:[#allocation2 + $0xc8] sm:$0xff]  ;;  %v782_v32 = vld [vmem:[#allocation2 + $0xa0] sm:$0xff]  ;;  %v826_v10 = vshrl.u32 %v159_v62, 7 }
  0x1b   :  { %71 = vadd.xlane.f32.xlu0 %v70_v11  ;;  %v76_v29 = vadd.f32 %v772_v27, %v770_v26  ;;  %v784_v33 = vld [vmem:[#allocation2 + $0xa8] sm:$0xff]  ;;  %v103_v34 = vadd.f32 %v780_v31, %v778_v30  ;;  %v790_v36 = vld [vmem:[#allocation2 + $0xb0] sm:$0xff]  ;;  %v792_v37 = vld [vmem:[#allocation2 + $0xb8] sm:$0xff]  ;;  %v165_v11 = vadd.s32 4294967288, %v160_v7 }
  0x1c   :  { %v97_v35 = vadd.f32 %v784_v33, %v782_v32  ;;  %v794_v38 = vld [vmem:[#allocation2 + $0xd0] sm:$0xff]  ;;  %v796_v39 = vld [vmem:[#allocation2 + $0xd8] sm:$0xff]  ;;  %v100_v40 = vadd.f32 %v792_v37, %v790_v36  ;;  %v806_v44 = vld [vmem:[#allocation2 + $0xe0] sm:$0xff] }
  0x1d   :  { %914 = vst [vmem:[#allocation8_spill] sm:$0xff] %v796_v39  ;;  %v106_v41 = vadd.f32 %v796_v39, %v794_v38  ;;  %v802_v42 = vld [vmem:[#allocation2 + $0xf0] sm:$0xff]  ;;  %v804_v43 = vld [vmem:[#allocation2 + $0xf8] sm:$0xff]  ;;  %v808_v45 = vld [vmem:[#allocation2 + $0xe8] sm:$0xff] }
  0x1e   :  { %86 = vadd.xlane.f32.xlu1 %v85_v16  ;;  %915 = vst [vmem:[#allocation9_spill] sm:$0xff] %v802_v42  ;;  %916 = vst [vmem:[#allocation10_spill] sm:$0xff] %v804_v43  ;;  %v112_v46 = vadd.f32 %v804_v43, %v802_v42  ;;  %v109_v47 = vadd.f32 %v808_v45, %v806_v44  ;;  %v132_v48 = vld [vmem:[%s906_s1] sm:$0xff]  ;;  %v133_v49 = vld [vmem:[%s906_s1 + $0x8] sm:$0xff] }
  0x1f   :  { %74 = vadd.xlane.f32.xlu0 %v73_v17  ;;  %v602_v50 = vpack.c.bf16 %v133_v49, %v132_v48  ;;  %v134_v52 = vld [vmem:[%s906_s1 + $0x10] sm:$0xff]  ;;  %v135_v53 = vld [vmem:[%s906_s1 + $0x18] sm:$0xff]  ;;  %v172_v17 = vadd.s32 4294967280, %v160_v7 }
  0x20   :  { %v605_v54 = vpack.c.bf16 %v135_v53, %v134_v52 }
  0x21   :  { %603 = vmatpush3.bf16.msra.mxu0 %v602_v50 }
  0x22   :  { %95 = vadd.xlane.f32.xlu1 %v94_v22  ;;  %604 = vmatprep.subr.bf16.mxu0 %v669_v51 }
  0x23   :  { %92 = vadd.xlane.f32.xlu0 %v91_v23  ;;  %v179_v23 = vadd.s32 4294967272, %v160_v7 }
  0x25   :  { %606 = vmatpush3.bf16.msra.mxu0 %v605_v54  ;;  %v182_v52 = vsub.s32 %v179_v23, %v826_v10 }
  0x26   :  { %89 = vadd.xlane.f32.xlu1 %v88_v28  ;;  %v163_v28 = vsub.s32 %v160_v7, %v826_v10 }
  0x27   :  { %77 = vadd.xlane.f32.xlu0 %v76_v29 }
  0x2a   :  { %104 = vadd.xlane.f32.xlu1 %v103_v34  ;;  %v168_v34 = vsub.s32 %v165_v11, %v826_v10 }
  0x2b   :  { %98 = vadd.xlane.f32.xlu0 %v97_v35 }
  0x2e   :  { %101 = vadd.xlane.f32.xlu1 %v100_v40 }
  0x2f   :  { %107 = vadd.xlane.f32.xlu0 %v106_v41 }
  0x32   :  { %113 = vadd.xlane.f32.xlu1 %v112_v46  ;;  %v175_v46 = vsub.s32 %v172_v17, %v826_v10 }
  0x33   :  { %110 = vadd.xlane.f32.xlu0 %v109_v47 }
  0xa3   :  { %v81_v56 = vpop.xlane.xlu1 %80 }
  0xa4   :  { %v69_v57 = vpop.xlane.xlu0 %68  ;;  %v120_v29 = vmul.f32 0.00390625, %v81_v56 }
  0xa5   :  { %v116_v54 = vmul.f32 0.00390625, %v69_v57 }
  0xa6   :  { %v189_v56 = vrot.slane %v120_v29, %v163_v28 }
  0xa7   :  { %v84_v58 = vpop.xlane.xlu1 %83  ;;  %v164_v23 = vrot.slane %v116_v54, %v163_v28 }
  0xa8   :  { %v72_v59 = vpop.xlane.xlu0 %71  ;;  %v121_v35 = vmul.f32 0.00390625, %v84_v58 }
  0xa9   :  { %v117_v41 = vmul.f32 0.00390625, %v72_v59 }
  0xaa   :  { %v193_v7 = vrot.slane %v121_v35, %v168_v34 }
  0xab   :  { %v87_v60 = vpop.xlane.xlu1 %86  ;;  %v169_v59 = vrot.slane %v117_v41, %v168_v34 }
  0xac   :  { %v75_v61 = vpop.xlane.xlu0 %74  ;;  %v122_v47 = vmul.f32 0.00390625, %v87_v60 }
  0xad   :  { %v118_v48 = vmul.f32 0.00390625, %v75_v61 }
  0xae   :  { %v198_v11 = vrot.slane %v122_v47, %v175_v46 }
  0xaf   :  { %v96_v63 = vpop.xlane.xlu1 %95  ;;  %v176_v17 = vrot.slane %v118_v48, %v175_v46 }
  0xb0   :  { %v93_v3 = vpop.xlane.xlu0 %92  ;;  %v125_v50 = vmul.f32 0.00390625, %v96_v63 }
  0xb1   :  { %v124_v51 = vmul.f32 0.00390625, %v93_v3 }
  0xb2   :  { %v212_v43 = vrot.slane %v125_v50, %v168_v34 }
  0xb3   :  { %v90_v16 = vpop.xlane.xlu1 %89  ;;  %v208_v63 = vrot.slane %v124_v51, %v163_v28 }
  0xb4   :  { %v78_v22 = vpop.xlane.xlu0 %77  ;;  %v123_v53 = vmul.f32 0.00390625, %v90_v16 }
  0xb5   :  { %v119_v55 = vmul.f32 0.00390625, %v78_v22  ;;  %v194_v22 = vsel %vm170_vm1, %v193_v7, %v189_v56  ;;  %v213_v51 = vsel %vm170_vm1, %v212_v43, %v208_v63 }
  0xb6   :  { %v203_v3 = vrot.slane %v123_v53, %v182_v52  ;;  %v199_v41 = vsel %vm177_vm2, %v198_v11, %v194_v22 }
  0xb7   :  { %v105_v40 = vpop.xlane.xlu1 %104  ;;  %v183_v16 = vrot.slane %v119_v55, %v182_v52 }
  0xb8   :  { %v99_v49 = vpop.xlane.xlu0 %98  ;;  %v128_v57 = vmul.f32 0.00390625, %v105_v40  ;;  %v204_v53 = vsel %vm184_vm3, %v203_v3, %v199_v41  ;;  %v574_v3 = vld [vmem:[%s909_s4] ss:$0 sm:$0xff] }
  0xb9   :  { %v126_v62 = vmul.f32 0.00390625, %v99_v49  ;;  %v171_v49 = vsel %vm170_vm1, %v169_v59, %v164_v23 }
  0xba   :  { %v178_v50 = vsel %vm177_vm2, %v176_v17, %v171_v49  ;;  %v227_v55 = vrot.slane %v128_v57, %v163_v28  ;;  %v572_v28 = vld [vmem:[%s907_s2] ss:$0 sm:$0xff]  ;;  %v417_v49 = vsub.s32 0, %v826_v10  ;;  %s672_s2 = smov [#allocation5]  }
  0xbb   :  { %v102_v58 = vpop.xlane.xlu1 %101  ;;  %v217_v39 = vrot.slane %v126_v62, %v175_v46  ;;  %v185_v54 = vsel %vm184_vm3, %v183_v16, %v178_v50  ;;  %v455_v50 = vsub.s32 2, %v826_v10 }
  0xbc   :  { %v127_v60 = vmul.f32 0.00390625, %v102_v58  ;;  %v108_v61 = vpop.xlane.xlu0 %107  ;;  %v244_v43 = vsel %vm243_vm4, %v204_v53, %v185_v54  ;;  %v474_v53 = vsub.s32 3, %v826_v10 }
  0xbd   :  { %v129_v42 = vmul.f32 0.00390625, %v108_v61  ;;  %v218_v62 = vsel %vm177_vm2, %v217_v39, %v213_v51  ;;  %v323_v39 = vld [vmem:[%s908_s3] sm:$0x3]  ;;  %s560_s3 = sshll.u32 %s672_s2, 4  ;;  %s561_s3 = int_to_ptr.vmem [resolvable:$true] %s560_s3 }
  0xbe   :  { %v222_v29 = vrot.slane %v127_v60, %v182_v52  ;;  %597 = vmatpush3.msk.msra.mxu1 %vm335_vm8, %v323_v39  ;;  %s640_s4 = scalar_lea.vmem %s561_s3, 4096  ;;  %p645_p9 = scmp.lt.s32.totalorder %s561_s3, %s561_s3 }
  0xbf   :  { %v114_v35 = vpop.xlane.xlu1 %113  ;;  %v231_v47 = vrot.slane %v129_v42, %v168_v34  ;;  %p641_p8 = scmp.ne.s32.totalorder %s561_s3, %s640_s4  ;;  %p646_p10 = scmp.lt.s32.totalorder %s640_s4, %s640_s4 }
  0xc0   :  { %v111_v48 = vpop.xlane.xlu0 %110  ;;  %v131_v58 = vmul.f32 0.00390625, %v114_v35  ;;  %v223_v7 = vsel %vm184_vm3, %v222_v29, %v218_v62 }
  0xc1   :  { %v130_v40 = vmul.f32 0.00390625, %v111_v48  ;;  %v232_v42 = vsel %vm170_vm1, %v231_v47, %v227_v55  ;;  %v246_v17 = vsel %vm245_vm5, %v223_v7, %v244_v43  ;;  %v436_v48 = vsub.s32 1, %v826_v10  ;;  %p647_p11 = por %p646_p10, %p645_p9 }
  0xc2   :  { %v241_v56 = vrot.slane %v131_v58, %v182_v52 }
  0xc3   :  { %v236_v59 = vrot.slane %v130_v40, %v175_v46  ;;  %p648_p12 = pnand %p647_p11, %p641_p8 }
  0xc5   :  { %v237_v34 = vsel %vm177_vm2, %v236_v59, %v232_v42 }
  0xc6   :  { %v242_v11 = vsel %vm184_vm3, %v241_v56, %v237_v34 }
  0xc7   :  { %v248_v60 = vsel %vm247_vm6, %v242_v11, %v246_v17 }
  0xc8   :  { %594 = vmatmul.mubr.msk.f32.vlgmr.msra.gmra.mrb[0].mxu0 %vm249_vm7, %v248_v60 }
 0x19b   :  { %v318_v46 = vpop.f32.mrb[0].mxu0 }
 0x19c   :  { %v319_v52 = vadd.f32 %v572_v28, %v318_v46  ;;  %v595_v61 = vpop.f32.mrb[1].mxu0 }
 0x19e   :  { %v322_v63 = vmax.f32 %v319_v52, 0.0 }
 0x1a0   :  { %599 = vmatmul.mubr.msk.f32.vlgmr.msra.gmra.mrb[0].mxu1 %vm331_vm9, %v322_v63 }
 0x273   :  { %v405_v23 = vpop.f32.mrb[0].mxu1 }
 0x274   :  { %v406_v16 = vadd.f32 %v574_v3, %v405_v23  ;;  %v600_v57 = vpop.f32.mrb[1].mxu1 }
 0x275   :  { %v918_v57 = vld [vmem:[#allocation9_spill] sm:$0xff] }
 0x276   :  { %v577_v22 = vmul.f32 -1.442695, %v406_v16 }
 0x278   :  { %614 = vpow2.f32 %v577_v22  ;;  %v919_v22 = vld [vmem:[#allocation10_spill] sm:$0xff] }
 0x282   :  { %v615_v29 = vpop.eup %614 }
 0x283   :  { %v412_v35 = vadd.f32 1.0, %v615_v29 }
 0x285   :  { %616 = vrcp.f32 %v412_v35 }
 0x28f   :  { %v617_v41 = vpop.eup %616 }
 0x290   :  { %v418_v47 = vrot.slane %v617_v41, %v417_v49  ;;  %v437_v58 = vrot.slane %v617_v41, %v436_v48  ;;  %v456_v51 = vrot.slane %v617_v41, %v455_v50  ;;  %v475_v40 = vrot.slane %v617_v41, %v474_v53 }
 0x292   :  { %424 = vbcast.lane.b32.xlu1 %v418_v47, 264  ;;  %420 = vbcast.lane.b32.xlu0 %v418_v47, 256 }
 0x296   :  { %428 = vbcast.lane.b32.xlu1 %v418_v47, 272  ;;  %439 = vbcast.lane.b32.xlu0 %v437_v58, 256 }
 0x29a   :  { %432 = vbcast.lane.b32.xlu1 %v418_v47, 280  ;;  %447 = vbcast.lane.b32.xlu0 %v437_v58, 272 }
 0x29e   :  { %443 = vbcast.lane.b32.xlu1 %v437_v58, 264  ;;  %458 = vbcast.lane.b32.xlu0 %v456_v51, 256 }
 0x2a2   :  { %451 = vbcast.lane.b32.xlu1 %v437_v58, 280  ;;  %466 = vbcast.lane.b32.xlu0 %v456_v51, 272 }
 0x2a6   :  { %462 = vbcast.lane.b32.xlu1 %v456_v51, 264  ;;  %477 = vbcast.lane.b32.xlu0 %v475_v40, 256 }
 0x2aa   :  { %470 = vbcast.lane.b32.xlu1 %v456_v51, 280  ;;  %485 = vbcast.lane.b32.xlu0 %v475_v40, 272 }
 0x2ae   :  { %481 = vbcast.lane.b32.xlu1 %v475_v40, 264 }
 0x2b2   :  { %489 = vbcast.lane.b32.xlu1 %v475_v40, 280 }
 0x304   :  { %v425_v54 = vpop.permute.xlu1 %424  ;;  %v421_v55 = vpop.permute.xlu0 %420 }
 0x305   :  { %v493_v62 = vmul.f32 %v425_v54, %v734_v8  ;;  %v494_v56 = vmul.f32 %v425_v54, %v736_v9  ;;  %v491_v7 = vmul.f32 %v421_v55, %v722_v2  ;;  %v492_v59 = vmul.f32 %v421_v55, %v726_v4 }
 0x307   :  { %525 = vst [vmem:[#allocation5 + $0x10] sm:$0xff] %v493_v62  ;;  %526 = vst [vmem:[#allocation5 + $0x18] sm:$0xff] %v494_v56 }
 0x308   :  { %523 = vst [vmem:[#allocation5] sm:$0xff] %v491_v7  ;;  %524 = vst [vmem:[#allocation5 + $0x8] sm:$0xff] %v492_v59  ;;  %v429_v10 = vpop.permute.xlu1 %428  ;;  %v440_v42 = vpop.permute.xlu0 %439 }
 0x309   :  { %v495_v34 = vmul.f32 %v429_v10, %v746_v14  ;;  %v496_v43 = vmul.f32 %v429_v10, %v748_v15  ;;  %v499_v11 = vmul.f32 %v440_v42, %v718_v0  ;;  %v500_v8 = vmul.f32 %v440_v42, %v720_v1 }
 0x30b   :  { %527 = vst [vmem:[#allocation5 + $0x20] sm:$0xff] %v495_v34  ;;  %528 = vst [vmem:[#allocation5 + $0x28] sm:$0xff] %v496_v43 }
 0x30c   :  { %531 = vst [vmem:[#allocation5 + $0x40] sm:$0xff] %v499_v11  ;;  %532 = vst [vmem:[#allocation5 + $0x48] sm:$0xff] %v500_v8  ;;  %v433_v2 = vpop.permute.xlu1 %432  ;;  %v448_v4 = vpop.permute.xlu0 %447 }
 0x30d   :  { %v497_v9 = vmul.f32 %v433_v2, %v770_v26  ;;  %v498_v17 = vmul.f32 %v433_v2, %v772_v27  ;;  %v503_v60 = vmul.f32 %v448_v4, %v742_v12  ;;  %v504_v14 = vmul.f32 %v448_v4, %v744_v13 }
 0x30f   :  { %529 = vst [vmem:[#allocation5 + $0x30] sm:$0xff] %v497_v9  ;;  %530 = vst [vmem:[#allocation5 + $0x38] sm:$0xff] %v498_v17 }
 0x310   :  { %535 = vst [vmem:[#allocation5 + $0x60] sm:$0xff] %v503_v60  ;;  %536 = vst [vmem:[#allocation5 + $0x68] sm:$0xff] %v504_v14  ;;  %v444_v0 = vpop.permute.xlu1 %443  ;;  %v459_v1 = vpop.permute.xlu0 %458 }
 0x311   :  { %v501_v15 = vmul.f32 %v444_v0, %v728_v5  ;;  %v502_v39 = vmul.f32 %v444_v0, %v730_v6  ;;  %v507_v28 = vmul.f32 %v459_v1, %v758_v20  ;;  %v508_v26 = vmul.f32 %v459_v1, %v760_v21 }
 0x313   :  { %533 = vst [vmem:[#allocation5 + $0x50] sm:$0xff] %v501_v15  ;;  %534 = vst [vmem:[#allocation5 + $0x58] sm:$0xff] %v502_v39 }
 0x314   :  { %539 = vst [vmem:[#allocation5 + $0x80] sm:$0xff] %v507_v28  ;;  %540 = vst [vmem:[#allocation5 + $0x88] sm:$0xff] %v508_v26  ;;  %v452_v12 = vpop.permute.xlu1 %451  ;;  %v467_v13 = vpop.permute.xlu0 %466 }
 0x315   :  { %v505_v27 = vmul.f32 %v452_v12, %v766_v24  ;;  %v506_v46 = vmul.f32 %v452_v12, %v768_v25  ;;  %v511_v52 = vmul.f32 %v467_v13, %v782_v32  ;;  %v512_v5 = vmul.f32 %v467_v13, %v784_v33 }
 0x317   :  { %537 = vst [vmem:[#allocation5 + $0x70] sm:$0xff] %v505_v27  ;;  %538 = vst [vmem:[#allocation5 + $0x78] sm:$0xff] %v506_v46 }
 0x318   :  { %543 = vst [vmem:[#allocation5 + $0xa0] sm:$0xff] %v511_v52  ;;  %544 = vst [vmem:[#allocation5 + $0xa8] sm:$0xff] %v512_v5  ;;  %v463_v6 = vpop.permute.xlu1 %462  ;;  %v478_v20 = vpop.permute.xlu0 %477 }
 0x319   :  { %v509_v21 = vmul.f32 %v463_v6, %v754_v18  ;;  %v510_v61 = vmul.f32 %v463_v6, %v756_v19  ;;  %v515_v63 = vmul.f32 %v478_v20, %v778_v30  ;;  %v516_v24 = vmul.f32 %v478_v20, %v780_v31  ;;  %v917_v31 = vld [vmem:[#allocation8_spill] sm:$0xff] }
 0x31b   :  { %541 = vst [vmem:[#allocation5 + $0x90] sm:$0xff] %v509_v21  ;;  %542 = vst [vmem:[#allocation5 + $0x98] sm:$0xff] %v510_v61 }
 0x31c   :  { %547 = vst [vmem:[#allocation5 + $0xc0] sm:$0xff] %v515_v63  ;;  %548 = vst [vmem:[#allocation5 + $0xc8] sm:$0xff] %v516_v24  ;;  %v471_v25 = vpop.permute.xlu1 %470  ;;  %v486_v32 = vpop.permute.xlu0 %485 }
 0x31d   :  { %v513_v33 = vmul.f32 %v471_v25, %v790_v36  ;;  %v514_v3 = vmul.f32 %v471_v25, %v792_v37  ;;  %v519_v23 = vmul.f32 %v486_v32, %v806_v44  ;;  %v520_v18 = vmul.f32 %v486_v32, %v808_v45 }
 0x31f   :  { %545 = vst [vmem:[#allocation5 + $0xb0] sm:$0xff] %v513_v33  ;;  %546 = vst [vmem:[#allocation5 + $0xb8] sm:$0xff] %v514_v3 }
 0x320   :  { %551 = vst [vmem:[#allocation5 + $0xe0] sm:$0xff] %v519_v23  ;;  %552 = vst [vmem:[#allocation5 + $0xe8] sm:$0xff] %v520_v18  ;;  %v482_v19 = vpop.permute.xlu1 %481 }
 0x321   :  { %v517_v30 = vmul.f32 %v482_v19, %v794_v38  ;;  %v518_v16 = vmul.f32 %v482_v19, %v917_v31 }
 0x323   :  { %549 = vst [vmem:[#allocation5 + $0xd0] sm:$0xff] %v517_v30  ;;  %550 = vst [vmem:[#allocation5 + $0xd8] sm:$0xff] %v518_v16 }
 0x324   :  { %v490_v36 = vpop.permute.xlu1 %489 }
 0x325   :  { %v521_v37 = vmul.f32 %v490_v36, %v918_v57  ;;  %v522_v44 = vmul.f32 %v490_v36, %v919_v22 }
 0x327   :  { %553 = vst [vmem:[#allocation5 + $0xf0] sm:$0xff] %v521_v37  ;;  %554 = vst [vmem:[#allocation5 + $0xf8] sm:$0xff] %v522_v44 }
 0x328   :  { %651 = shalt.err (!%p648_p12)
}
 0x329   :  { %s652_s21 = scalar_lea.hbm %s910_s5, 4096 }
 0x32a   :  { %p653_p13 = scmp.ne.s32.totalorder %s910_s5, %s652_s21  ;;  %p656_p0 = scmp.lt.u32.totalorder %s652_s21, %s910_s5 }
 0x32c   :  { %p658_p1 = pnand %p656_p0, %p653_p13 }
 0x32e   :  { %661 = shalt.err (!%p658_p1)
}
 0x32f   :  { %566 = dma.vmem_to_hbm [thread:$0]  %s561_s3, 4096, %s910_s5, [#allocation4], %s667_s28, %s667_s28, %s668_s29  }
 0x330   :  { %664 = dma.done.wait [#allocation4], 4096  }
 0x331   :  { %665 = vsyncadd [#allocation4], 4294963200 }
 0x332   :  { %570 = vsyncpa [#allocation3], 1 }
 0x333   :  { %571 = vsyncpa [#allocation4], 1 }

</bundles_post_ra>
